<compile_context>
chip_gen: v6e
topology: v6e:2x2x1
jax: 0.10.0
libtpu: 0.0.40
codegen_flags: <defaults>
</compile_context>

<pallas_src>
import functools
from typing import NamedTuple

import jax
import jax.numpy as jnp
from jax.experimental import pallas as pl
from jax.experimental.pallas import tpu as pltpu

BN_EPS = 1e-5  # nn.BatchNorm1d default


# ----------------------------------------------------------------------------
# Helpers
# ----------------------------------------------------------------------------
def _round_up(x, m):
    return ((x + m - 1) // m) * m


def _num_tensorcores():
    """Best-effort TensorCores-per-chip detection (for the megacore split)."""
    try:
        kind = jax.devices()[0].device_kind.lower()
    except Exception:
        return 1
    if "lite" in kind:
        return 1
    if "v5e" in kind or "v6" in kind:
        return 1
    if any(tag in kind for tag in ("v4", "v5", "v7", "7x")):
        return 2
    return 1


def _vmem_budget_bytes():
    """~3/4 of per-core VMEM (96 MiB on v5e/v6e, 48 MiB on v7x); conservative
    48 MiB fallback if the hardware query is unavailable."""
    cap = None
    try:
        cap = getattr(pltpu.get_tpu_info(), "vmem_capacity_bytes", None)
    except Exception:
        cap = None
    if not cap:
        cap = 64 * 1024 * 1024
    return int(cap) * 3 // 4


def _stage1_vmem_bytes(n_pad, tk, tn):
    return (2 * n_pad * tk * 2      # x tile (bf16) x 2 pipeline buffers
            + 2 * tk * tn * 2       # W6 tile (bf16) x 2 pipeline buffers
            + n_pad * tn * 4        # f32 accumulator scratch
            + 2 * n_pad * tn * 2    # h output tile (bf16) x 2 buffers
            + 4 * tn * 8)           # packed gamma/beta (+ slack)


def _pick_tk(k_aligned, n_pad, tn, budget, tk_max=2048):
    """Largest K tile (multiple of 128) that fits the VMEM budget, preferring
    a tile that minimises K padding (padded zero rows of W6 are streamed from
    HBM on every call)."""
    hi = min(tk_max, k_aligned)
    hi = max(128, (hi // 128) * 128)
    while hi > 128 and _stage1_vmem_bytes(n_pad, hi, tn) > budget:
        hi = max(128, ((hi // 2) // 128) * 128)
    best = hi
    best_pad = (-k_aligned) % hi
    t = hi
    while t >= max(128, hi // 2):
        pad = (-k_aligned) % t
        if pad < best_pad:
            best, best_pad = t, pad
            if pad == 0:
                break
        t -= 128
    return best


# ----------------------------------------------------------------------------
# Parameter packing (one-time; do NOT call per forward pass)
# ----------------------------------------------------------------------------
class FRTwoMLPHeadConfig(NamedTuple):
    k_in: int
    k_pad: int
    rep: int
    rep_pad: int
    tk: int
    tn: int
    vmem_limit: int


def pack_frtwomlp_params(w6_t, b6, w7_t, b7, bn_gamma, bn_beta, *,
                         n_hint=512, tk_max=2048):
    """Packs FRTwoMLPHead parameters once:
      * fc6/fc7 weights (already transposed to (in, out)) cast to bf16 and
        zero-padded to tile multiples exactly once.
      * gamma/beta packed into a single (2, rep_pad) f32 array (one DMA).
      * b6/b7 dropped: a per-feature constant added before a training-mode
        BatchNorm is exactly cancelled by the batch-mean subtraction.
    Returns ((w6, w7, bn), config).
    """
    del b6, b7  # cancel exactly against training-mode BN mean subtraction

    k_in, rep = w6_t.shape
    rep_pad = _round_up(rep, 128)
    k_aligned = _round_up(k_in, 128)

    # Split the rep (output-column) dimension across TensorCores where the
    # chip has two of them (v7x/v4/v5p); single block otherwise.
    if _num_tensorcores() >= 2 and rep_pad >= 256 and (rep_pad // 2) % 128 == 0:
        tn = rep_pad // 2
    else:
        tn = rep_pad

    budget = _vmem_budget_bytes()
    n_pad_hint = _round_up(max(n_hint, 8), 8)
    tk = _pick_tk(k_aligned, n_pad_hint, tn, budget, tk_max=tk_max)
    k_pad = _round_up(k_aligned, tk)

    w6 = jnp.pad(w6_t.astype(jnp.bfloat16),
                 ((0, k_pad - k_in), (0, rep_pad - rep)))
    w7 = jnp.pad(w7_t.astype(jnp.bfloat16),
                 ((0, rep_pad - rep), (0, rep_pad - rep)))
    gamma = jnp.pad(jnp.reshape(bn_gamma, (1, rep)).astype(jnp.float32),
                    ((0, 0), (0, rep_pad - rep)), constant_values=1.0)
    beta = jnp.pad(jnp.reshape(bn_beta, (1, rep)).astype(jnp.float32),
                   ((0, 0), (0, rep_pad - rep)))
    bn = jnp.concatenate([gamma, beta], axis=0)

    cfg = FRTwoMLPHeadConfig(k_in=k_in, k_pad=k_pad, rep=rep, rep_pad=rep_pad,
                             tk=tk, tn=tn, vmem_limit=budget)
    return (w6, w7, bn), cfg


# ----------------------------------------------------------------------------
# Kernels
# ----------------------------------------------------------------------------
def _bn_train(h, gamma, beta, n_valid):
    """BatchNorm1d, training mode (biased batch stats), f32 math.
    Centered two-pass variance; padded batch rows masked out of the stats."""
    n_pad = h.shape[0]
    inv_n = jnp.float32(1.0 / n_valid)
    if n_valid < n_pad:  # static Python branch
        mask = (jax.lax.broadcasted_iota(jnp.int32, (n_pad, 1), 0)
                < n_valid).astype(h.dtype)
    else:
        mask = None
    hm = h if mask is None else h * mask
    mean = jnp.sum(hm, axis=0, keepdims=True) * inv_n
    d = h - mean
    dm = d if mask is None else d * mask
    var = jnp.sum(dm * dm, axis=0, keepdims=True) * inv_n
    return d * (jax.lax.rsqrt(var + BN_EPS) * gamma) + beta


def _fc6_bn_kernel(x_ref, w6_ref, bn_ref, h_ref, acc_ref, *, n_valid):
    """K-tiled fc6 (bf16 MXU, f32 accumulation) + training-mode BN epilogue."""
    k = pl.program_id(1)

    @pl.when(k == 0)
    def _init():
        acc_ref[...] = jnp.zeros_like(acc_ref)

    acc_ref[...] += jnp.dot(x_ref[...], w6_ref[...],
                            preferred_element_type=jnp.float32)

    @pl.when(k == pl.num_programs(1) - 1)
    def _finalize():
        params = bn_ref[...]
        h = _bn_train(acc_ref[...], params[0:1, :], params[1:2, :], n_valid)
        h_ref[...] = h.astype(h_ref.dtype)


def _fc7_bn_kernel(h_ref, w7_ref, bn_ref, out_ref, *, n_valid):
    """fc7 (bf16 MXU, f32 acc) + second application of the SAME BatchNorm1d."""
    params = bn_ref[...]
    y = jnp.dot(h_ref[...], w7_ref[...], preferred_element_type=jnp.float32)
    out_ref[...] = _bn_train(y, params[0:1, :], params[1:2, :], n_valid)


# ----------------------------------------------------------------------------
# Jitted forward
# ----------------------------------------------------------------------------
@functools.partial(jax.jit,
                   static_argnames=("k_in", "k_pad", "rep", "rep_pad",
                                    "tk", "tn", "vmem_limit"))
def _frtwomlp_apply(query_features, w6, w7, bn, *, k_in, k_pad, rep, rep_pad,
                    tk, tn, vmem_limit):
    n = query_features.shape[0]
    n_pad = _round_up(max(n, 1), 8)

    # torch.flatten(start_dim=1) on the NCHW tensor; cast to bf16 BEFORE
    # padding so only 2-byte data is padded, all fused under this jit.
    x = query_features.reshape(n, -1)
    assert x.shape[1] == k_in
    x = x.astype(jnp.bfloat16)
    x = jnp.pad(x, ((0, n_pad - n), (0, k_pad - k_in)))

    # Safety: if the actual batch is much larger than the packing n_hint,
    # shrink the K tile (still dividing k_pad) so stage 1 stays in budget.
    while (tk % 256 == 0
           and _stage1_vmem_bytes(n_pad, tk, tn) > (vmem_limit * 9) // 10):
        tk //= 2

    # Stage 1: fc6 + BN1. rep columns "parallel" (megacore), K streamed.
    h = pl.pallas_call(
        functools.partial(_fc6_bn_kernel, n_valid=n),
        out_shape=jax.ShapeDtypeStruct((n_pad, rep_pad), jnp.bfloat16),
        grid_spec=pltpu.PrefetchScalarGridSpec(
            num_scalar_prefetch=0,
            grid=(rep_pad // tn, k_pad // tk),
            in_specs=[
                pl.BlockSpec((n_pad, tk), lambda j, k: (0, k)),  # x: stream K
                pl.BlockSpec((tk, tn), lambda j, k: (k, j)),     # W6: stream
                pl.BlockSpec((2, tn), lambda j, k: (0, j)),      # gamma/beta
            ],
            out_specs=pl.BlockSpec((n_pad, tn), lambda j, k: (0, j)),
            scratch_shapes=[pltpu.VMEM((n_pad, tn), jnp.float32)],
        ),
        compiler_params=pltpu.CompilerParams(
            dimension_semantics=("parallel", "arbitrary"),
            vmem_limit_bytes=vmem_limit,
        ),
    )(x, w6, bn)

    # Stage 2: fc7 + BN2 (tiny epilogue; rep columns "parallel").
    out = pl.pallas_call(
        functools.partial(_fc7_bn_kernel, n_valid=n),
        out_shape=jax.ShapeDtypeStruct((n_pad, rep_pad), jnp.float32),
        grid_spec=pltpu.PrefetchScalarGridSpec(
            num_scalar_prefetch=0,
            grid=(rep_pad // tn,),
            in_specs=[
                pl.BlockSpec((n_pad, rep_pad), lambda j: (0, 0)),  # h resident
                pl.BlockSpec((rep_pad, tn), lambda j: (0, j)),     # W7 cols
                pl.BlockSpec((2, tn), lambda j: (0, j)),           # gamma/beta
            ],
            out_specs=pl.BlockSpec((n_pad, tn), lambda j: (0, j)),
        ),
        compiler_params=pltpu.CompilerParams(
            dimension_semantics=("parallel",),
            vmem_limit_bytes=vmem_limit,
        ),
    )(h, w7, bn)

    return out[:n, :rep]


def frtwomlp_head(query_features, packed_params, config):
    """FRTwoMLPHead.forward: returns (query_features, x) with x: (N, rep)."""
    w6, w7, bn = packed_params
    x = _frtwomlp_apply(query_features, w6, w7, bn, **config._asdict())
    return query_features, x


# ----------------------------------------------------------------------------
# Reference & demo
# ----------------------------------------------------------------------------
def _reference(query_features, w6_t, w7_t, gamma, beta):
    """Plain-JAX reference mirroring the kernel math (bf16 matmuls, f32 BN)."""
    n = query_features.shape[0]
    x = query_features.reshape(n, -1).astype(jnp.bfloat16)

    def bn(v):
        m = jnp.mean(v, axis=0, keepdims=True)
        var = jnp.mean((v - m) ** 2, axis=0, keepdims=True)
        return ((v - m) * jax.lax.rsqrt(var + BN_EPS) * gamma.reshape(1, -1)
                + beta.reshape(1, -1))

    h = jnp.dot(x, w6_t.astype(jnp.bfloat16),
                preferred_element_type=jnp.float32)
    h = bn(h)
    h = jnp.dot(h.astype(jnp.bfloat16), w7_t.astype(jnp.bfloat16),
                preferred_element_type=jnp.float32)
    return bn(h)


if __name__ == "__main__":
    # Small TPU-friendly shapes: N=8 ROIs, C=4, s=16 -> in_channels = 1024.
    N, C, S = 8, 4, 16
    IN_CHANNELS = C * S * S          # 1024
    REP = 128                        # representation_size

    key = jax.random.PRNGKey(0)
    k_x, k_w6, k_b6, k_w7, k_b7 = jax.random.split(key, 5)

    query_features = jax.random.normal(k_x, (N, C, S, S), dtype=jnp.float32)

    # Deterministic synthetic parameters (PyTorch-like small uniform init).
    w6_t = jax.random.uniform(k_w6, (IN_CHANNELS, REP), jnp.float32,
                              -0.03, 0.03)
    b6 = jax.random.uniform(k_b6, (1, REP), jnp.float32, -0.03, 0.03)
    w7_t = jax.random.uniform(k_w7, (REP, REP), jnp.float32, -0.09, 0.09)
    b7 = jax.random.uniform(k_b7, (1, REP), jnp.float32, -0.09, 0.09)
    bn_gamma = jnp.ones((1, REP), jnp.float32)   # BatchNorm1d default weight
    bn_beta = jnp.zeros((1, REP), jnp.float32)   # BatchNorm1d default bias

    packed, cfg = pack_frtwomlp_params(w6_t, b6, w7_t, b7, bn_gamma, bn_beta,
                                       n_hint=N)
    qf_out, x_out = frtwomlp_head(query_features, packed, cfg)
    jax.block_until_ready((qf_out, x_out))

    assert qf_out.shape == (N, C, S, S)
    assert x_out.shape == (N, REP)

    # Sanity check against a matching-precision plain-JAX reference.
    ref = _reference(query_features, w6_t, w7_t, bn_gamma, bn_beta)
    assert jnp.allclose(x_out, ref, atol=1e-2, rtol=1e-2), (
        float(jnp.max(jnp.abs(x_out - ref))))

    print("KERNEL_OK")
</pallas_src>

<mosaic_0001>
module attributes {stable_mosaic.version = 11 : i64} {
  func.func @_fc7_bn_kernel(%arg0: i32, %arg1: memref<8x128xbf16, #tpu.memory_space<vmem>>, %arg2: memref<128x128xbf16, #tpu.memory_space<vmem>>, %arg3: memref<2x128xf32, #tpu.memory_space<vmem>>, %arg4: memref<8x128xf32, #tpu.memory_space<vmem>>) attributes {dimension_semantics = [#tpu.dimension_semantics<parallel>], iteration_bounds = array<i64: 1>, scalar_prefetch = 0 : i64, scratch_operands = 0 : i64, tpu.core_type = #tpu.core_type<tc>, window_params = [{pipeline_mode = #tpu.pipeline_mode<synchronous>, transform_indices = @transform_0, window_bounds = array<i64: 8, 128>}, {transform_indices = @transform_1, window_bounds = array<i64: 128, 128>}, {transform_indices = @transform_2, window_bounds = array<i64: 2, 128>}, {transform_indices = @transform_3, window_bounds = array<i64: 8, 128>}]} {
    %c0 = arith.constant 0 : index
    %c0_0 = arith.constant 0 : index
    %0 = vector.load %arg3[%c0, %c0_0] : memref<2x128xf32, #tpu.memory_space<vmem>>, vector<2x128xf32>
    %c0_1 = arith.constant 0 : index
    %c0_2 = arith.constant 0 : index
    %1 = vector.load %arg1[%c0_1, %c0_2] : memref<8x128xbf16, #tpu.memory_space<vmem>>, vector<8x128xbf16>
    %c0_3 = arith.constant 0 : index
    %c0_4 = arith.constant 0 : index
    %2 = vector.load %arg2[%c0_3, %c0_4] : memref<128x128xbf16, #tpu.memory_space<vmem>>, vector<128x128xbf16>
    %cst = arith.constant dense<0.000000e+00> : vector<8x128xf32>
    %3 = tpu.matmul %1, %2, %cst {dimension_numbers = #tpu.dot_dimension_numbers<[1], [0], [0], [1], [0, 0, 1, 1], [], []>} : vector<8x128xbf16>, vector<128x128xbf16>, vector<8x128xf32> -> vector<8x128xf32>
    %4 = vector.extract_strided_slice %0 {offsets = [0, 0], sizes = [1, 128], strides = [1, 1]} : vector<2x128xf32> to vector<1x128xf32>
    %5 = vector.extract_strided_slice %0 {offsets = [1, 0], sizes = [1, 128], strides = [1, 1]} : vector<2x128xf32> to vector<1x128xf32>
    %cst_5 = arith.constant dense<0.000000e+00> : vector<128xf32>
    %6 = vector.multi_reduction <add>, %3, %cst_5 [0] : vector<8x128xf32> to vector<128xf32>
    %7 = vector.shape_cast %6 : vector<128xf32> to vector<1x128xf32>
    %cst_6 = arith.constant 1.250000e-01 : f32
    %8 = vector.broadcast %cst_6 : f32 to vector<1x128xf32>
    %9 = arith.mulf %7, %8 : vector<1x128xf32>
    %10 = vector.broadcast %9 : vector<1x128xf32> to vector<8x128xf32>
    %11 = arith.subf %3, %10 : vector<8x128xf32>
    %12 = arith.mulf %11, %11 : vector<8x128xf32>
    %cst_7 = arith.constant dense<0.000000e+00> : vector<128xf32>
    %13 = vector.multi_reduction <add>, %12, %cst_7 [0] : vector<8x128xf32> to vector<128xf32>
    %14 = vector.shape_cast %13 : vector<128xf32> to vector<1x128xf32>
    %cst_8 = arith.constant 1.250000e-01 : f32
    %15 = vector.broadcast %cst_8 : f32 to vector<1x128xf32>
    %16 = arith.mulf %14, %15 : vector<1x128xf32>
    %cst_9 = arith.constant 9.99999974E-6 : f32
    %17 = vector.broadcast %cst_9 : f32 to vector<1x128xf32>
    %18 = arith.addf %16, %17 : vector<1x128xf32>
    %19 = math.rsqrt %18 : vector<1x128xf32>
    %20 = arith.mulf %19, %4 : vector<1x128xf32>
    %21 = vector.broadcast %20 : vector<1x128xf32> to vector<8x128xf32>
    %22 = arith.mulf %11, %21 : vector<8x128xf32>
    %23 = vector.broadcast %5 : vector<1x128xf32> to vector<8x128xf32>
    %24 = arith.addf %22, %23 : vector<8x128xf32>
    %c0_10 = arith.constant 0 : index
    %c0_11 = arith.constant 0 : index
    %25 = vector.load %arg4[%c0_10, %c0_11] : memref<8x128xf32, #tpu.memory_space<vmem>>, vector<8x128xf32>
    tpu.vector_store %arg4[%c0_10, %c0_11], %24 {strides = array<i32>} : memref<8x128xf32, #tpu.memory_space<vmem>>, vector<8x128xf32>,
    return
  }
  func.func @transform_0(%arg0: i32) -> (i32, i32) {
    %c0_i32 = arith.constant 0 : i32
    %c0_i32_0 = arith.constant 0 : i32
    %c0_i32_1 = arith.constant 0 : i32
    return %c0_i32, %c0_i32_0 : i32, i32
  }
  func.func @transform_1(%arg0: i32) -> (i32, i32) {
    %c0_i32 = arith.constant 0 : i32
    %c0_i32_0 = arith.constant 0 : i32
    return %c0_i32, %arg0 : i32, i32
  }
  func.func @transform_2(%arg0: i32) -> (i32, i32) {
    %c0_i32 = arith.constant 0 : i32
    %c0_i32_0 = arith.constant 0 : i32
    return %c0_i32, %arg0 : i32, i32
  }
  func.func @transform_3(%arg0: i32) -> (i32, i32) {
    %c0_i32 = arith.constant 0 : i32
    %c0_i32_0 = arith.constant 0 : i32
    return %c0_i32, %arg0 : i32, i32
  }
}

module attributes {stable_mosaic.version = 11 : i64} {
  func.func @_fc6_bn_kernel(%arg0: i32, %arg1: i32, %arg2: memref<8x1024xbf16, #tpu.memory_space<vmem>>, %arg3: memref<1024x128xbf16, #tpu.memory_space<vmem>>, %arg4: memref<2x128xf32, #tpu.memory_space<vmem>>, %arg5: memref<8x128xbf16, #tpu.memory_space<vmem>>, %arg6: memref<8x128xf32, #tpu.memory_space<vmem>>) attributes {dimension_semantics = [#tpu.dimension_semantics<parallel>, #tpu.dimension_semantics<arbitrary>], iteration_bounds = array<i64: 1, 1>, scalar_prefetch = 0 : i64, scratch_operands = 1 : i64, tpu.core_type = #tpu.core_type<tc>, window_params = [{transform_indices = @transform_0, window_bounds = array<i64: 8, 1024>}, {transform_indices = @transform_1, window_bounds = array<i64: 1024, 128>}, {transform_indices = @transform_2, window_bounds = array<i64: 2, 128>}, {transform_indices = @transform_3, window_bounds = array<i64: 8, 128>}]} {
    %c0_i32 = arith.constant 0 : i32
    %0 = arith.cmpi eq, %arg1, %c0_i32 : i32
    %1 = arith.extui %0 : i1 to i32
    %c0_i32_0 = arith.constant 0 : i32
    %2 = arith.cmpi ne, %1, %c0_i32_0 : i32
    scf.if %2 {
      %cst_10 = arith.constant 0.000000e+00 : f32
      %12 = vector.broadcast %cst_10 : f32 to vector<8x128xf32>
      %c0_11 = arith.constant 0 : index
      %c0_12 = arith.constant 0 : index
      %13 = vector.load %arg6[%c0_11, %c0_12] : memref<8x128xf32, #tpu.memory_space<vmem>>, vector<8x128xf32>
      tpu.vector_store %arg6[%c0_11, %c0_12], %12 {strides = array<i32>} : memref<8x128xf32, #tpu.memory_space<vmem>>, vector<8x128xf32>,
    } else {
    }
    %c0 = arith.constant 0 : index
    %c0_1 = arith.constant 0 : index
    %3 = vector.load %arg6[%c0, %c0_1] : memref<8x128xf32, #tpu.memory_space<vmem>>, vector<8x128xf32>
    %c0_2 = arith.constant 0 : index
    %c0_3 = arith.constant 0 : index
    %4 = vector.load %arg2[%c0_2, %c0_3] : memref<8x1024xbf16, #tpu.memory_space<vmem>>, vector<8x1024xbf16>
    %c0_4 = arith.constant 0 : index
    %c0_5 = arith.constant 0 : index
    %5 = vector.load %arg3[%c0_4, %c0_5] : memref<1024x128xbf16, #tpu.memory_space<vmem>>, vector<1024x128xbf16>
    %cst = arith.constant dense<0.000000e+00> : vector<8x128xf32>
    %6 = tpu.matmul %4, %5, %cst {dimension_numbers = #tpu.dot_dimension_numbers<[1], [0], [0], [1], [0, 0, 1, 1], [], []>} : vector<8x1024xbf16>, vector<1024x128xbf16>, vector<8x128xf32> -> vector<8x128xf32>
    %7 = arith.addf %3, %6 : vector<8x128xf32>
    %c0_6 = arith.constant 0 : index
    %c0_7 = arith.constant 0 : index
    %8 = vector.load %arg6[%c0_6, %c0_7] : memref<8x128xf32, #tpu.memory_space<vmem>>, vector<8x128xf32>
    tpu.vector_store %arg6[%c0_6, %c0_7], %7 {strides = array<i32>} : memref<8x128xf32, #tpu.memory_space<vmem>>, vector<8x128xf32>,
    %c0_i32_8 = arith.constant 0 : i32
    %9 = arith.cmpi eq, %arg1, %c0_i32_8 : i32
    %10 = arith.extui %9 : i1 to i32
    %c0_i32_9 = arith.constant 0 : i32
    %11 = arith.cmpi ne, %10, %c0_i32_9 : i32
    scf.if %11 {
      %c0_10 = arith.constant 0 : index
      %c0_11 = arith.constant 0 : index
      %12 = vector.load %arg4[%c0_10, %c0_11] : memref<2x128xf32, #tpu.memory_space<vmem>>, vector<2x128xf32>
      %c0_12 = arith.constant 0 : index
      %c0_13 = arith.constant 0 : index
      %13 = vector.load %arg6[%c0_12, %c0_13] : memref<8x128xf32, #tpu.memory_space<vmem>>, vector<8x128xf32>
      %14 = vector.extract_strided_slice %12 {offsets = [0, 0], sizes = [1, 128], strides = [1, 1]} : vector<2x128xf32> to vector<1x128xf32>
      %15 = vector.extract_strided_slice %12 {offsets = [1, 0], sizes = [1, 128], strides = [1, 1]} : vector<2x128xf32> to vector<1x128xf32>
      %cst_14 = arith.constant dense<0.000000e+00> : vector<128xf32>
      %16 = vector.multi_reduction <add>, %13, %cst_14 [0] : vector<8x128xf32> to vector<128xf32>
      %17 = vector.shape_cast %16 : vector<128xf32> to vector<1x128xf32>
      %cst_15 = arith.constant 1.250000e-01 : f32
      %18 = vector.broadcast %cst_15 : f32 to vector<1x128xf32>
      %19 = arith.mulf %17, %18 : vector<1x128xf32>
      %20 = vector.broadcast %19 : vector<1x128xf32> to vector<8x128xf32>
      %21 = arith.subf %13, %20 : vector<8x128xf32>
      %22 = arith.mulf %21, %21 : vector<8x128xf32>
      %cst_16 = arith.constant dense<0.000000e+00> : vector<128xf32>
      %23 = vector.multi_reduction <add>, %22, %cst_16 [0] : vector<8x128xf32> to vector<128xf32>
      %24 = vector.shape_cast %23 : vector<128xf32> to vector<1x128xf32>
      %cst_17 = arith.constant 1.250000e-01 : f32
      %25 = vector.broadcast %cst_17 : f32 to vector<1x128xf32>
      %26 = arith.mulf %24, %25 : vector<1x128xf32>
      %cst_18 = arith.constant 9.99999974E-6 : f32
      %27 = vector.broadcast %cst_18 : f32 to vector<1x128xf32>
      %28 = arith.addf %26, %27 : vector<1x128xf32>
      %29 = math.rsqrt %28 : vector<1x128xf32>
      %30 = arith.mulf %29, %14 : vector<1x128xf32>
      %31 = vector.broadcast %30 : vector<1x128xf32> to vector<8x128xf32>
      %32 = arith.mulf %21, %31 : vector<8x128xf32>
      %33 = vector.broadcast %15 : vector<1x128xf32> to vector<8x128xf32>
      %34 = arith.addf %32, %33 : vector<8x128xf32>
      %35 = arith.truncf %34 : vector<8x128xf32> to vector<8x128xbf16>
      %c0_19 = arith.constant 0 : index
      %c0_20 = arith.constant 0 : index
      %36 = vector.load %arg5[%c0_19, %c0_20] : memref<8x128xbf16, #tpu.memory_space<vmem>>, vector<8x128xbf16>
      tpu.vector_store %arg5[%c0_19, %c0_20], %35 {strides = array<i32>} : memref<8x128xbf16, #tpu.memory_space<vmem>>, vector<8x128xbf16>,
    } else {
    }
    return
  }
  func.func @transform_0(%arg0: i32, %arg1: i32) -> (i32, i32) {
    %c0_i32 = arith.constant 0 : i32
    %c0_i32_0 = arith.constant 0 : i32
    return %c0_i32, %arg1 : i32, i32
  }
  func.func @transform_1(%arg0: i32, %arg1: i32) -> (i32, i32) {
    %c0_i32 = arith.constant 0 : i32
    return %arg1, %arg0 : i32, i32
  }
  func.func @transform_2(%arg0: i32, %arg1: i32) -> (i32, i32) {
    %c0_i32 = arith.constant 0 : i32
    %c0_i32_0 = arith.constant 0 : i32
    return %c0_i32, %arg0 : i32, i32
  }
  func.func @transform_3(%arg0: i32, %arg1: i32) -> (i32, i32) {
    %c0_i32 = arith.constant 0 : i32
    %c0_i32_0 = arith.constant 0 : i32
    return %c0_i32, %arg0 : i32, i32
  }
}

</mosaic_0001>

<bundles_post_ra>
// kernel: _frtwomlp_apply.3
= control target key start
LH: loop header
LB: loop body
LE: loop exit
PB: predicated region body
PF: predicated region fallthrough
CT: control target
= control target key end

     0   :  { %v238_v1 = vmov 0.0   ;;  %vm239_vm0 = vmmov 0   ;;  %s294_s0 = inlined_call_operand.vmem [shape: bf16[8,128], index: 0, kind: input, shape index: {}]   ;;  %s295_s1 = inlined_call_operand.vmem [shape: bf16[128,128], index: 1, kind: input, shape index: {}]   ;;  %s296_s2 = inlined_call_operand.vmem [shape: f32[2,128], index: 2, kind: input, shape index: {}]   ;;  %s297_s3 = inlined_call_operand.hbm [shape: f32[8,128], index: 3, kind: output, shape index: {}]  }
   0x1   :  { %v206_v0 = vld [vmem:[%s295_s1 + $0x38] sm:$0xff]   ;;  %183 = vmatprep.subr.bf16.mxu0 %v238_v1  ;;  %v207_v2 = vld [vmem:[%s295_s1 + $0x30] sm:$0xff]   ;;  %199 = vmatprep.mubr.msk.bf16.mxu0 %vm239_vm0, %v238_v1  ;;  %v208_v3 = vld [vmem:[%s295_s1 + $0x28] sm:$0xff]  }
   0x2   :  { %184 = vmatpush3.bf16.msra.mxu0 %v206_v0 }
   0x3   :  { %185 = vmatprep.subr.bf16.mxu0 %v238_v1 }
   0x6   :  { %186 = vmatpush3.bf16.msra.mxu0 %v207_v2 }
   0x7   :  { %187 = vmatprep.subr.bf16.mxu0 %v238_v1 }
   0x8   :  { %8 = vsyncpa [#allocation3], 0  ;;  %v209_v4 = vld [vmem:[%s295_s1 + $0x20] sm:$0xff]   ;;  %v210_v5 = vld [vmem:[%s295_s1 + $0x18] sm:$0xff]   ;;  %v141_v31 = vlaneseq  ;;  %s240_s30 = smov [#allocation2]  }
   0x9   :  { %v211_v6 = vld [vmem:[%s295_s1 + $0x10] sm:$0xff]   ;;  %v212_v7 = vld [vmem:[%s295_s1 + $0x8] sm:$0xff]   ;;  %v213_v8 = vld [vmem:[%s295_s1] sm:$0xff]   ;;  %s158_s4 = sshll.u32 %s240_s30, 4  ;;  %s159_s4 = int_to_ptr.vmem [resolvable:$true] %s158_s4 }
   0xa   :  { %188 = vmatpush3.bf16.msra.mxu0 %v208_v3  ;;  %v17_v9 = vld [vmem:[%s294_s0] sm:$0xf]  ;;  %v142_v32 = vshrl.u32 %v141_v31, 7  ;;  %s216_s5 = scalar_lea.vmem %s159_s4, 128  ;;  %p221_p1 = scmp.lt.s32.totalorder %s159_s4, %s159_s4 }
   0xb   :  { %189 = vmatprep.subr.bf16.mxu0 %v238_v1  ;;  %v16_v33 = vld [vmem:[%s296_s2] sm:$0x3]  ;;  %p217_p0 = scmp.ne.s32.totalorder %s159_s4, %s216_s5  ;;  %p222_p2 = scmp.lt.s32.totalorder %s216_s5, %s216_s5 }
   0xc   :  { %v143_v34 = vsub.s32 0, %v142_v32  ;;  %v148_v35 = vsub.s32 1, %v142_v32 }
   0xd   :  { %p223_p3 = por %p222_p2, %p221_p1 }
   0xe   :  { %190 = vmatpush3.bf16.msra.mxu0 %v209_v4  ;;  %v149_v39 = vrot.slane %v16_v33, %v148_v35 }
   0xf   :  { %191 = vmatprep.subr.bf16.mxu0 %v238_v1  ;;  %p224_p4 = pnand %p223_p3, %p217_p0 }
  0x12   :  { %192 = vmatpush3.bf16.msra.mxu0 %v210_v5 }
  0x13   :  { %193 = vmatprep.subr.bf16.mxu0 %v238_v1 }
  0x16   :  { %194 = vmatpush3.bf16.msra.mxu0 %v211_v6 }
  0x17   :  { %195 = vmatprep.subr.bf16.mxu0 %v238_v1 }
  0x1a   :  { %196 = vmatpush3.bf16.msra.mxu0 %v212_v7 }
  0x1b   :  { %197 = vmatprep.subr.bf16.mxu0 %v238_v1 }
  0x1e   :  { %198 = vmatpush3.bf16.msra.mxu0 %v213_v8 }
  0x21   :  { %200 = vmatmul.mubr.bf16.vlgmr.msra.gmra.mxu0 %v17_v9 }
  0xe1   :  { %v116_v10 = vpop.f32.mrf.mxu0 }
  0xe2   :  { %v122_v11 = vrot.slane %v116_v10, 4 }
  0xe3   :  { %v201_v12 = vpop.f32.mrf.mxu0 }
  0xe4   :  { %v123_v13 = vadd.f32 %v122_v11, %v116_v10 }
  0xe5   :  { %v119_v14 = vpop.f32.mrf.mxu0 }
  0xe6   :  { %v124_v15 = vrot.slane %v123_v13, 2 }
  0xe7   :  { %v202_v16 = vpop.f32.mrf.mxu0 }
  0xe8   :  { %v125_v17 = vadd.f32 %v124_v15, %v123_v13 }
  0xea   :  { %v126_v18 = vrot.slane %v125_v17, 1 }
  0xec   :  { %v127_v19 = vadd.f32 %v126_v18, %v125_v17 }
  0xee   :  { %v128_v20 = vmul.f32 0.125, %v127_v19 }
  0xf0   :  { %v129_v21 = vsub.f32 %v116_v10, %v128_v20 }
  0xf2   :  { %v130_v22 = vmul.f32 %v129_v21, %v129_v21 }
  0xf4   :  { %v131_v23 = vrot.slane %v130_v22, 4 }
  0xf6   :  { %v132_v24 = vadd.f32 %v131_v23, %v130_v22 }
  0xf8   :  { %v133_v25 = vrot.slane %v132_v24, 2 }
  0xfa   :  { %v134_v26 = vadd.f32 %v133_v25, %v132_v24 }
  0xfc   :  { %v135_v27 = vrot.slane %v134_v26, 1 }
  0xfe   :  { %v136_v28 = vadd.f32 %v135_v27, %v134_v26 }
 0x100   :  { %v137_v29 = vmul.f32 0.125, %v136_v28 }
 0x102   :  { %v138_v30 = vadd.f32 1e-05, %v137_v29 }
 0x104   :  { %214 = vrsqrt.f32 %v138_v30 }
 0x111   :  { %v215_v36 = vpop.eup %214 }
 0x112   :  { %v140_v37 = vmul.f32 %v215_v36, %v16_v33 }
 0x114   :  { %v144_v38 = vrot.slane %v140_v37, %v143_v34 }
 0x116   :  { %v145_v40 = vmul.f32 %v144_v38, %v129_v21 }
 0x118   :  { %v150_v41 = vadd.f32 %v149_v39, %v145_v40 }
 0x11a   :  { %151 = vst [vmem:[#allocation2] sm:$0xff] %v150_v41 }
 0x11b   :  { %227 = shalt.err (!%p224_p4)
}
 0x11c   :  { %161 = dma.vmem_to_hbm [thread:$0]  %s159_s4, 128, %s297_s3, [#allocation3]  }
 0x11d   :  { %236 = dma.done.wait [#allocation3], 128  }
 0x11e   :  { %237 = vsyncadd [#allocation3], 4294967168 }
 0x11f   :  { %165 = vsyncpa [#allocation3], 1 }

// kernel: _frtwomlp_apply.2
= control target key start
LH: loop header
LB: loop body
LE: loop exit
PB: predicated region body
PF: predicated region fallthrough
CT: control target
= control target key end

     0   :  { %s1231_s1 = inlined_call_operand.vmem [shape: bf16[1024,128], index: 1, kind: input, shape index: {}]   ;;  %s1232_s0 = inlined_call_operand.vmem [shape: bf16[8,1024], index: 0, kind: input, shape index: {}]   ;;  %s1233_s2 = inlined_call_operand.vmem [shape: f32[2,128], index: 2, kind: input, shape index: {}]   ;;  %s1234_s3 = inlined_call_operand.vmem [shape: bf16[8,128], index: 3, kind: output, shape index: {}]  }
   0x1   :  { %v927_v0 = vld [vmem:[%s1231_s1 + $0x78] sm:$0xff]   ;;  %v931_v4 = vld [vmem:[%s1231_s1 + $0x70] sm:$0xff]   ;;  %v935_v8 = vld [vmem:[%s1231_s1 + $0x68] sm:$0xff]  }
   0x2   :  { %v928_v1 = vld [vmem:[%s1231_s1 + $0xf8] sm:$0xff]   ;;  %839 = vmatprep.subr.bf16.mxu0 %v927_v0  ;;  %v932_v5 = vld [vmem:[%s1231_s1 + $0xf0] sm:$0xff]   ;;  %v936_v9 = vld [vmem:[%s1231_s1 + $0xe8] sm:$0xff]  }
   0x3   :  { %v929_v2 = vld [vmem:[%s1231_s1 + $0x38] sm:$0xff]   ;;  %861 = vmatprep.subr.bf16.mxu1 %v928_v1  ;;  %v933_v6 = vld [vmem:[%s1231_s1 + $0x30] sm:$0xff]   ;;  %v937_v10 = vld [vmem:[%s1231_s1 + $0x28] sm:$0xff]  }
   0x4   :  { %v930_v3 = vld [vmem:[%s1231_s1 + $0xb8] sm:$0xff]   ;;  %840 = vmatpush3.bf16.msra.mxu0 %v929_v2  ;;  %v934_v7 = vld [vmem:[%s1231_s1 + $0xb0] sm:$0xff]   ;;  %v938_v11 = vld [vmem:[%s1231_s1 + $0xa8] sm:$0xff]  }
   0x5   :  { %862 = vmatpush3.bf16.msra.mxu1 %v930_v3  ;;  %841 = vmatprep.subr.bf16.mxu0 %v931_v4  ;;  %v939_v12 = vld [vmem:[%s1231_s1 + $0x60] sm:$0xff]   ;;  %v943_v16 = vld [vmem:[%s1231_s1 + $0x58] sm:$0xff]   ;;  %v947_v20 = vld [vmem:[%s1231_s1 + $0x50] sm:$0xff]  }
   0x6   :  { %863 = vmatprep.subr.bf16.mxu1 %v932_v5  ;;  %v940_v13 = vld [vmem:[%s1231_s1 + $0xe0] sm:$0xff]   ;;  %v944_v17 = vld [vmem:[%s1231_s1 + $0xd8] sm:$0xff]   ;;  %v948_v21 = vld [vmem:[%s1231_s1 + $0xd0] sm:$0xff]  }
   0x7   :  { %v941_v14 = vld [vmem:[%s1231_s1 + $0x20] sm:$0xff]   ;;  %v945_v18 = vld [vmem:[%s1231_s1 + $0x18] sm:$0xff]   ;;  %v949_v22 = vld [vmem:[%s1231_s1 + $0x10] sm:$0xff]  }
   0x8   :  { %842 = vmatpush3.bf16.msra.mxu0 %v933_v6  ;;  %v942_v15 = vld [vmem:[%s1231_s1 + $0xa0] sm:$0xff]   ;;  %v946_v19 = vld [vmem:[%s1231_s1 + $0x98] sm:$0xff]   ;;  %v950_v23 = vld [vmem:[%s1231_s1 + $0x90] sm:$0xff]  }
   0x9   :  { %864 = vmatpush3.bf16.msra.mxu1 %v934_v7  ;;  %843 = vmatprep.subr.bf16.mxu0 %v935_v8  ;;  %v951_v24 = vld [vmem:[%s1231_s1 + $0x48] sm:$0xff]   ;;  %v955_v28 = vld [vmem:[%s1231_s1 + $0x40] sm:$0xff]   ;;  %v963_v38 = vld [vmem:[%s1231_s1 + $0x178] sm:$0xff]  }
   0xa   :  { %865 = vmatprep.subr.bf16.mxu1 %v936_v9  ;;  %v952_v25 = vld [vmem:[%s1231_s1 + $0xc8] sm:$0xff]   ;;  %v956_v29 = vld [vmem:[%s1231_s1 + $0xc0] sm:$0xff]   ;;  %v964_v39 = vld [vmem:[%s1231_s1 + $0x1f8] sm:$0xff]  }
   0xb   :  { %v953_v26 = vld [vmem:[%s1231_s1 + $0x8] sm:$0xff]   ;;  %v957_v30 = vld [vmem:[%s1231_s1] sm:$0xff]   ;;  %v965_v40 = vld [vmem:[%s1231_s1 + $0x138] sm:$0xff]  }
   0xc   :  { %844 = vmatpush3.bf16.msra.mxu0 %v937_v10  ;;  %v954_v27 = vld [vmem:[%s1231_s1 + $0x88] sm:$0xff]   ;;  %v958_v31 = vld [vmem:[%s1231_s1 + $0x80] sm:$0xff]   ;;  %v966_v41 = vld [vmem:[%s1231_s1 + $0x1b8] sm:$0xff]  }
   0xd   :  { %866 = vmatpush3.bf16.msra.mxu1 %v938_v11  ;;  %845 = vmatprep.subr.bf16.mxu0 %v939_v12  ;;  %v21_v32 = vld [vmem:[%s1232_s0] sm:$0xff]  ;;  %v22_v33 = vld [vmem:[%s1232_s0 + $0x8] sm:$0xff]  ;;  %v967_v42 = vld [vmem:[%s1231_s1 + $0x170] sm:$0xff]  }
   0xe   :  { %867 = vmatprep.subr.bf16.mxu1 %v940_v13  ;;  %v767_v34 = vcombine.low %v21_v32, %v21_v32  ;;  %v768_v35 = vcombine.high %v21_v32, %v21_v32  ;;  %v769_v36 = vcombine.low %v22_v33, %v22_v33  ;;  %v770_v37 = vcombine.high %v22_v33, %v22_v33  ;;  %v968_v43 = vld [vmem:[%s1231_s1 + $0x1f0] sm:$0xff]   ;;  %v971_v46 = vld [vmem:[%s1231_s1 + $0x168] sm:$0xff]   ;;  %v975_v50 = vld [vmem:[%s1231_s1 + $0x160] sm:$0xff]  }
   0xf   :  { %v969_v44 = vld [vmem:[%s1231_s1 + $0x130] sm:$0xff]   ;;  %v972_v47 = vld [vmem:[%s1231_s1 + $0x1e8] sm:$0xff]   ;;  %v976_v51 = vld [vmem:[%s1231_s1 + $0x1e0] sm:$0xff]  }
  0x10   :  { %846 = vmatpush3.bf16.msra.mxu0 %v941_v14  ;;  %597 = vmatprep.mubr.bf16.mxu0 %v768_v35  ;;  %v970_v45 = vld [vmem:[%s1231_s1 + $0x1b0] sm:$0xff]   ;;  %v973_v48 = vld [vmem:[%s1231_s1 + $0x128] sm:$0xff]   ;;  %v977_v52 = vld [vmem:[%s1231_s1 + $0x120] sm:$0xff]  }
  0x11   :  { %868 = vmatpush3.bf16.msra.mxu1 %v942_v15  ;;  %847 = vmatprep.subr.bf16.mxu0 %v943_v16  ;;  %v974_v49 = vld [vmem:[%s1231_s1 + $0x1a8] sm:$0xff]   ;;  %v978_v53 = vld [vmem:[%s1231_s1 + $0x1a0] sm:$0xff]   ;;  %v979_v54 = vld [vmem:[%s1231_s1 + $0x158] sm:$0xff]  }
  0x12   :  { %869 = vmatprep.subr.bf16.mxu1 %v944_v17  ;;  %637 = vmatprep.mubr.bf16.mxu1 %v770_v37  ;;  %v980_v55 = vld [vmem:[%s1231_s1 + $0x1d8] sm:$0xff]   ;;  %v983_v58 = vld [vmem:[%s1231_s1 + $0x150] sm:$0xff]   ;;  %v987_v62 = vld [vmem:[%s1231_s1 + $0x148] sm:$0xff]  }
  0x13   :  { %v981_v56 = vld [vmem:[%s1231_s1 + $0x118] sm:$0xff]   ;;  %v984_v59 = vld [vmem:[%s1231_s1 + $0x1d0] sm:$0xff]   ;;  %v988_v63 = vld [vmem:[%s1231_s1 + $0x1c8] sm:$0xff]  }
  0x14   :  { %848 = vmatpush3.bf16.msra.mxu0 %v945_v18  ;;  %v982_v57 = vld [vmem:[%s1231_s1 + $0x198] sm:$0xff]   ;;  %v985_v60 = vld [vmem:[%s1231_s1 + $0x110] sm:$0xff]   ;;  %v989_v0 = vld [vmem:[%s1231_s1 + $0x108] sm:$0xff]  }
  0x15   :  { %870 = vmatpush3.bf16.msra.mxu1 %v946_v19  ;;  %849 = vmatprep.subr.bf16.mxu0 %v947_v20  ;;  %v986_v61 = vld [vmem:[%s1231_s1 + $0x190] sm:$0xff]   ;;  %v990_v1 = vld [vmem:[%s1231_s1 + $0x188] sm:$0xff]   ;;  %v991_v2 = vld [vmem:[%s1231_s1 + $0x140] sm:$0xff]  }
  0x16   :  { %871 = vmatprep.subr.bf16.mxu1 %v948_v21  ;;  %v992_v3 = vld [vmem:[%s1231_s1 + $0x1c0] sm:$0xff]   ;;  %v23_v6 = vld [vmem:[%s1232_s0 + $0x10] sm:$0xff]  ;;  %v24_v9 = vld [vmem:[%s1232_s0 + $0x18] sm:$0xff] }
  0x17   :  { %v993_v4 = vld [vmem:[%s1231_s1 + $0x100] sm:$0xff]   ;;  %v771_v7 = vcombine.low %v23_v6, %v23_v6  ;;  %v772_v8 = vcombine.high %v23_v6, %v23_v6  ;;  %v773_v10 = vcombine.low %v24_v9, %v24_v9  ;;  %v774_v11 = vcombine.high %v24_v9, %v24_v9 }
  0x18   :  { %850 = vmatpush3.bf16.msra.mxu0 %v949_v22  ;;  %v994_v5 = vld [vmem:[%s1231_s1 + $0x180] sm:$0xff]  }
  0x19   :  { %872 = vmatpush3.bf16.msra.mxu1 %v950_v23  ;;  %851 = vmatprep.subr.bf16.mxu0 %v951_v24 }
  0x1a   :  { %873 = vmatprep.subr.bf16.mxu1 %v952_v25 }
  0x1c   :  { %852 = vmatpush3.bf16.msra.mxu0 %v953_v26 }
  0x1d   :  { %874 = vmatpush3.bf16.msra.mxu1 %v954_v27  ;;  %853 = vmatprep.subr.bf16.mxu0 %v955_v28 }
  0x1e   :  { %875 = vmatprep.subr.bf16.mxu1 %v956_v29 }
  0x20   :  { %854 = vmatpush3.bf16.msra.mxu0 %v957_v30 }
  0x21   :  { %876 = vmatpush3.bf16.msra.mxu1 %v958_v31  ;;  %883 = vmatprep.subr.bf16.mxu0 %v963_v38 }
  0x22   :  { %905 = vmatprep.subr.bf16.mxu1 %v964_v39 }
  0x23   :  { %598 = vmatmul.mubr.bf16.vlgmr.msra.gmra.mxu0 %v767_v34 }
  0x24   :  { %638 = vmatmul.mubr.bf16.vlgmr.msra.gmra.mxu1 %v769_v36  ;;  %884 = vmatpush3.bf16.msra.mxu0 %v965_v40 }
  0x25   :  { %906 = vmatpush3.bf16.msra.mxu1 %v966_v41  ;;  %885 = vmatprep.subr.bf16.mxu0 %v967_v42 }
  0x26   :  { %907 = vmatprep.subr.bf16.mxu1 %v968_v43  ;;  %677 = vmatprep.mubr.bf16.mxu0 %v772_v8 }
  0x27   :  { %717 = vmatprep.mubr.bf16.mxu1 %v774_v11 }
  0x28   :  { %886 = vmatpush3.bf16.msra.mxu0 %v969_v44 }
  0x29   :  { %908 = vmatpush3.bf16.msra.mxu1 %v970_v45  ;;  %887 = vmatprep.subr.bf16.mxu0 %v971_v46 }
  0x2a   :  { %909 = vmatprep.subr.bf16.mxu1 %v972_v47 }
  0x2c   :  { %888 = vmatpush3.bf16.msra.mxu0 %v973_v48 }
  0x2d   :  { %910 = vmatpush3.bf16.msra.mxu1 %v974_v49  ;;  %889 = vmatprep.subr.bf16.mxu0 %v975_v50 }
  0x2e   :  { %911 = vmatprep.subr.bf16.mxu1 %v976_v51 }
  0x30   :  { %890 = vmatpush3.bf16.msra.mxu0 %v977_v52  ;;  %v751_v52 = vlaneseq }
  0x31   :  { %912 = vmatpush3.bf16.msra.mxu1 %v978_v53  ;;  %891 = vmatprep.subr.bf16.mxu0 %v979_v54  ;;  %v730_v54 = vld [vmem:[%s1233_s2] sm:$0x3] }
  0x32   :  { %913 = vmatprep.subr.bf16.mxu1 %v980_v55  ;;  %v752_v53 = vshrl.u32 %v751_v52, 7 }
  0x34   :  { %892 = vmatpush3.bf16.msra.mxu0 %v981_v56  ;;  %v753_v55 = vsub.s32 0, %v752_v53  ;;  %v758_v56 = vsub.s32 1, %v752_v53 }
  0x35   :  { %914 = vmatpush3.bf16.msra.mxu1 %v982_v57  ;;  %893 = vmatprep.subr.bf16.mxu0 %v983_v58 }
  0x36   :  { %915 = vmatprep.subr.bf16.mxu1 %v984_v59 }
  0x38   :  { %894 = vmatpush3.bf16.msra.mxu0 %v985_v60  ;;  %v759_v60 = vrot.slane %v730_v54, %v758_v56 }
  0x39   :  { %916 = vmatpush3.bf16.msra.mxu1 %v986_v61  ;;  %895 = vmatprep.subr.bf16.mxu0 %v987_v62 }
  0x3a   :  { %917 = vmatprep.subr.bf16.mxu1 %v988_v63 }
  0x3c   :  { %896 = vmatpush3.bf16.msra.mxu0 %v989_v0 }
  0x3d   :  { %918 = vmatpush3.bf16.msra.mxu1 %v990_v1  ;;  %897 = vmatprep.subr.bf16.mxu0 %v991_v2 }
  0x3e   :  { %919 = vmatprep.subr.bf16.mxu1 %v992_v3 }
  0x40   :  { %898 = vmatpush3.bf16.msra.mxu0 %v993_v4 }
  0x41   :  { %920 = vmatpush3.bf16.msra.mxu1 %v994_v5 }
  0x43   :  { %678 = vmatmul.mubr.bf16.vlgmr.msra.gmra.mxu0 %v771_v7 }
  0x44   :  { %718 = vmatmul.mubr.bf16.vlgmr.msra.gmra.mxu1 %v773_v10 }
  0xe3   :  { %v855_v12 = vpop.f32.mrf.mxu0 }
  0xe4   :  { %v877_v13 = vpop.f32.mrf.mxu1 }
  0xe5   :  { %v856_v14 = vpop.f32.mrf.mxu0 }
  0xe6   :  { %v878_v15 = vpop.f32.mrf.mxu1  ;;  %v857_v20 = vadd.f32 %v856_v14, %v855_v12 }
  0xe7   :  { %v858_v16 = vpop.f32.mrf.mxu0  ;;  %v879_v21 = vadd.f32 %v878_v15, %v877_v13 }
  0xe8   :  { %v880_v17 = vpop.f32.mrf.mxu1 }
  0xe9   :  { %v859_v18 = vpop.f32.mrf.mxu0  ;;  %v640_v26 = vadd.f32 %v879_v21, %v857_v20 }
  0xea   :  { %v881_v19 = vpop.f32.mrf.mxu1 }
 0x103   :  { %v899_v22 = vpop.f32.mrf.mxu0 }
 0x104   :  { %v921_v23 = vpop.f32.mrf.mxu1 }
 0x105   :  { %v900_v24 = vpop.f32.mrf.mxu0 }
 0x106   :  { %v922_v25 = vpop.f32.mrf.mxu1  ;;  %v901_v27 = vadd.f32 %v900_v24, %v899_v22 }
 0x107   :  { %v902_v28 = vpop.f32.mrf.mxu0  ;;  %v923_v31 = vadd.f32 %v922_v25, %v921_v23 }
 0x108   :  { %v924_v29 = vpop.f32.mrf.mxu1  ;;  %v680_v30 = vadd.f32 %v901_v27, %v640_v26 }
 0x109   :  { %v903_v32 = vpop.f32.mrf.mxu0 }
 0x10a   :  { %v925_v33 = vpop.f32.mrf.mxu1  ;;  %v720_v34 = vadd.f32 %v923_v31, %v680_v30 }
 0x10c   :  { %v732_v35 = vrot.slane %v720_v34, 4 }
 0x10e   :  { %v733_v36 = vadd.f32 %v732_v35, %v720_v34 }
 0x110   :  { %v734_v37 = vrot.slane %v733_v36, 2 }
 0x112   :  { %v735_v38 = vadd.f32 %v734_v37, %v733_v36 }
 0x114   :  { %v736_v39 = vrot.slane %v735_v38, 1 }
 0x116   :  { %v737_v40 = vadd.f32 %v736_v39, %v735_v38 }
 0x118   :  { %v738_v41 = vmul.f32 0.125, %v737_v40 }
 0x11a   :  { %v739_v42 = vsub.f32 %v720_v34, %v738_v41 }
 0x11c   :  { %v740_v43 = vmul.f32 %v739_v42, %v739_v42 }
 0x11e   :  { %v741_v44 = vrot.slane %v740_v43, 4 }
 0x120   :  { %v742_v45 = vadd.f32 %v741_v44, %v740_v43 }
 0x122   :  { %v743_v46 = vrot.slane %v742_v45, 2 }
 0x124   :  { %v744_v47 = vadd.f32 %v743_v46, %v742_v45 }
 0x126   :  { %v745_v48 = vrot.slane %v744_v47, 1 }
 0x128   :  { %v746_v49 = vadd.f32 %v745_v48, %v744_v47 }
 0x12a   :  { %v747_v50 = vmul.f32 0.125, %v746_v49 }
 0x12c   :  { %v748_v51 = vadd.f32 1e-05, %v747_v50 }
 0x12e   :  { %999 = vrsqrt.f32 %v748_v51 }
 0x13b   :  { %v1000_v57 = vpop.eup %999 }
 0x13c   :  { %v750_v58 = vmul.f32 %v1000_v57, %v730_v54 }
 0x13e   :  { %v754_v59 = vrot.slane %v750_v58, %v753_v55 }
 0x140   :  { %v755_v61 = vmul.f32 %v754_v59, %v739_v42 }
 0x142   :  { %v760_v62 = vadd.f32 %v759_v60, %v755_v61 }
 0x144   :  { %v761_v63 = vpack.c.bf16 %v760_v62, %v760_v62 }
 0x146   :  { %762 = vst [vmem:[%s1234_s3] sm:$0xf] %v761_v63 }

</bundles_post_ra>
